<compile_context>
chip_gen: v7x
topology: tpu7x:2x2x1
jax: 0.10.0
libtpu: 0.0.40
codegen_flags: <defaults>
</compile_context>

<pallas_src>
import functools
import math

import jax
import jax.numpy as jnp
from jax.experimental import pallas as pl
from jax.experimental.pallas import tpu as pltpu


def _sigmoid(v):
    # exp and approximate reciprocal both run on the EUP -> VALU stays free.
    return pl.reciprocal(1.0 + jnp.exp(-v), approx=True)


def _accumulate_taps(p_all, rows, lane, l_pad, l_true):
    """Shift-accumulate the 7 taps of a packed 'same' (pad=3) conv matmul.

    p_all rows [k*rows, (k+1)*rows) hold tap k's product W_k @ input; tap k's
    contribution to output lane l is that product at lane (l + k - 3).  The
    shift is a circular XLU roll, so the <=3 wrapped / out-of-range lanes per
    tap are masked to reproduce PyTorch's zero padding (also when
    l_true == l_pad and there is no zero slack at the right edge).
    """
    acc = None
    for k in range(7):
        pk = p_all[k * rows:(k + 1) * rows, :]
        if k != 3:
            pk = pltpu.roll(pk, (3 - k) % l_pad, axis=1)
        if k < 3:                       # left edge: input columns < 0
            pk = jnp.where(lane >= (3 - k), pk, 0.0)
        elif k > 3:                     # right edge: columns >= l_true (+ wrap)
            pk = jnp.where(lane < (l_true + 3 - k), pk, 0.0)
        acc = pk if acc is None else acc + pk
    return acc


def _cbam_kernel(x_ref, w1_ref, w2_ref, wc1_ref, bc1_ref, wc2_ref, bc2_ref,
                 o_ref, *, l_true):
    # x_ref   : (B_blk, C_pad, L_pad)   native dtype
    # w1_ref  : (mid_pad, C_pad)        SE fc1 weight
    # w2_ref  : (C_pad, mid_pad)        SE fc2 weight
    # wc1_ref : (7*mid_pad, C_pad)      conv1 weights, taps stacked row-major
    # bc1_ref : (mid_pad, 1)            conv1 bias
    # wc2_ref : (8, mid_pad)            conv2 weights (7 taps + 1 zero row)
    # bc2_ref : (1, 1)                  conv2 bias
    # o_ref   : (B_blk, C_pad, L_pad)   native dtype
    b_blk, _, l_pad = x_ref.shape
    mid_pad = bc1_ref.shape[0]

    lane = jax.lax.broadcasted_iota(jnp.int32, (1, l_pad), 1)   # single reused iota
    inv_l = 1.0 / l_true

    w1 = w1_ref[...]
    w2 = w2_ref[...]
    wc1 = wc1_ref[...]
    bc1 = bc1_ref[...]
    wc2 = wc2_ref[...]
    bc2 = bc2_ref[...]

    for b in range(b_blk):                       # static unroll over batch sub-block
        x = x_ref[b].astype(jnp.float32)                                   # (C_pad, L_pad)

        # ---------------- channel attention (SEBlock1D) ----------------
        m = jnp.sum(x, axis=-1, keepdims=True) * inv_l                     # (C_pad, 1)
        h = jnp.maximum(jnp.dot(w1, m, preferred_element_type=jnp.float32), 0.0)
        g = _sigmoid(jnp.dot(w2, h, preferred_element_type=jnp.float32))   # (C_pad, 1)
        x_out = x * g                                                      # (C_pad, L_pad)

        # -------- spatial conv1 (k=7, "same"): one packed MXU push --------
        p_all = jnp.dot(wc1, x_out, preferred_element_type=jnp.float32)    # (7*mid_pad, L_pad)
        z = jnp.maximum(
            _accumulate_taps(p_all, mid_pad, lane, l_pad, l_true) + bc1, 0.0)
        if l_true < l_pad:
            # zero the padded tail so conv2 sees PyTorch's zero padding
            z = jnp.where(lane < l_true, z, 0.0)

        # -------- spatial conv2 (k=7, "same"): one packed MXU push --------
        q_all = jnp.dot(wc2, z, preferred_element_type=jnp.float32)        # (8, L_pad)
        s = _sigmoid(_accumulate_taps(q_all, 1, lane, l_pad, l_true) + bc2)  # (1, L_pad)

        o_ref[b] = (x_out * s).astype(o_ref.dtype)


def _round_up(v, m):
    return (v + m - 1) // m * m


def _pick_batch_block(n, slab_bytes):
    """Largest divisor of n (<=8) whose block stays under ~1 MiB of input."""
    budget = 1 << 20
    best = 1
    for b in range(1, min(n, 8) + 1):
        if n % b == 0 and b * slab_bytes <= budget:
            best = b
    return best


@jax.jit
def cbam(x, w1, w2, wc1, bc1, wc2, bc2):
    """CBAM forward.

    x  : (N, C, L)     any float dtype (DMA'd in native dtype)
    w1 : (mid, C)      SE fc1 weight (no bias), mid = C // reduction
    w2 : (C, mid)      SE fc2 weight (no bias)
    wc1: (mid, C, 7)   spatial conv1 weight,  bc1: (mid,)
    wc2: (1, mid, 7)   spatial conv2 weight,  bc2: (1,)
    """
    N, C, L = x.shape
    mid = w1.shape[0]
    assert w1.shape == (mid, C) and w2.shape == (C, mid)
    assert wc1.shape == (mid, C, 7) and bc1.shape == (mid,)
    assert wc2.shape == (1, mid, 7) and bc2.shape == (1,)

    C_pad = _round_up(C, 8)
    mid_pad = _round_up(max(mid, 1), 8)
    L_pad = _round_up(L, 128)
    aligned = (C_pad == C) and (L_pad == L)
    f32 = jnp.float32

    # x stays in its native dtype; zero-pad only when the shape is ragged.
    x_in = x if aligned else jnp.pad(x, ((0, 0), (0, C_pad - C), (0, L_pad - L)))

    # Tiny weights: padding / tap-major stacking / f32 cast hoisted to wrapper.
    w1_p = jnp.pad(w1.astype(f32), ((0, mid_pad - mid), (0, C_pad - C)))
    w2_p = jnp.pad(w2.astype(f32), ((0, C_pad - C), (0, mid_pad - mid)))
    wc1_s = jnp.pad(jnp.transpose(wc1.astype(f32), (2, 0, 1)),
                    ((0, 0), (0, mid_pad - mid), (0, C_pad - C))
                    ).reshape(7 * mid_pad, C_pad)                  # (7*mid_pad, C_pad)
    bc1_p = jnp.pad(bc1.astype(f32), ((0, mid_pad - mid),)).reshape(mid_pad, 1)
    wc2_s = jnp.pad(jnp.transpose(wc2.astype(f32), (2, 0, 1)).reshape(7, mid),
                    ((0, 1), (0, mid_pad - mid)))                  # (8, mid_pad)
    bc2_p = bc2.astype(f32).reshape(1, 1)

    itemsize = x.dtype.itemsize
    slab_bytes = C_pad * L_pad * itemsize
    B_blk = _pick_batch_block(N, slab_bytes)

    weight_bytes = 4 * (w1_p.size + w2_p.size + wc1_s.size + bc1_p.size
                        + wc2_s.size + bc2_p.size)
    block_bytes = B_blk * slab_bytes
    work_bytes = 4 * (2 * C_pad + 8 * mid_pad + 24) * L_pad
    vmem_need = 8 * block_bytes + 2 * weight_bytes + 2 * work_bytes + (1 << 20)
    vmem_limit = int(min(64 << 20, max(16 << 20, vmem_need)))

    cost = pl.CostEstimate(
        flops=int(N * (14 * mid_pad * C_pad * L_pad
                       + 16 * mid_pad * L_pad
                       + 4 * mid_pad * C_pad
                       + 6 * C_pad * L_pad)),
        transcendentals=int(N * (C_pad + L_pad)),
        bytes_accessed=int(2 * N * C_pad * L_pad * itemsize + weight_bytes),
    )

    kernel = functools.partial(_cbam_kernel, l_true=L)

    out = pl.pallas_call(
        kernel,
        out_shape=jax.ShapeDtypeStruct((N, C_pad, L_pad), x.dtype),
        grid_spec=pltpu.PrefetchScalarGridSpec(
            num_scalar_prefetch=0,
            grid=(N // B_blk,),
            in_specs=[
                pl.BlockSpec((B_blk, C_pad, L_pad), lambda n: (n, 0, 0)),   # x
                pl.BlockSpec((mid_pad, C_pad), lambda n: (0, 0)),           # w1 (resident)
                pl.BlockSpec((C_pad, mid_pad), lambda n: (0, 0)),           # w2
                pl.BlockSpec((7 * mid_pad, C_pad), lambda n: (0, 0)),       # wc1 taps
                pl.BlockSpec((mid_pad, 1), lambda n: (0, 0)),               # bc1
                pl.BlockSpec((8, mid_pad), lambda n: (0, 0)),               # wc2 taps
                pl.BlockSpec((1, 1), lambda n: (0, 0)),                     # bc2
            ],
            out_specs=pl.BlockSpec((B_blk, C_pad, L_pad), lambda n: (n, 0, 0)),
        ),
        compiler_params=pltpu.CompilerParams(
            dimension_semantics=("parallel",),
            vmem_limit_bytes=vmem_limit,
        ),
        cost_estimate=cost,
    )(x_in, w1_p, w2_p, wc1_s, bc1_p, wc2_s, bc2_p)

    return out if aligned else out[:, :C, :L]


def _cbam_reference(x, w1, w2, wc1, bc1, wc2, bc2):
    """Pure-JAX reference matching the PyTorch module."""
    m = jnp.mean(x, axis=-1)                              # (N, C)
    h = jax.nn.relu(m @ w1.T)                             # (N, mid)
    g = jax.nn.sigmoid(h @ w2.T)                          # (N, C)
    x_out = x * g[:, :, None]
    dn = ("NCH", "OIH", "NCH")
    z = jax.lax.conv_general_dilated(x_out, wc1, (1,), [(3, 3)],
                                     dimension_numbers=dn)
    z = jax.nn.relu(z + bc1[None, :, None])
    s = jax.lax.conv_general_dilated(z, wc2, (1,), [(3, 3)],
                                     dimension_numbers=dn)
    s = jax.nn.sigmoid(s + bc2[None, :, None])
    return x_out * s


def _make_inputs(key, N, C, L, reduction):
    mid = max(C // reduction, 1)
    ks = jax.random.split(key, 7)
    x = jax.random.normal(ks[0], (N, C, L), dtype=jnp.float32)
    w1 = jax.random.normal(ks[1], (mid, C), dtype=jnp.float32) / math.sqrt(C)
    w2 = jax.random.normal(ks[2], (C, mid), dtype=jnp.float32) / math.sqrt(mid)
    wc1 = jax.random.normal(ks[3], (mid, C, 7), dtype=jnp.float32) / math.sqrt(7 * C)
    bc1 = jax.random.normal(ks[4], (mid,), dtype=jnp.float32) * 0.1
    wc2 = jax.random.normal(ks[5], (1, mid, 7), dtype=jnp.float32) / math.sqrt(7 * mid)
    bc2 = jax.random.normal(ks[6], (1,), dtype=jnp.float32) * 0.1
    return x, w1, w2, wc1, bc1, wc2, bc2


if __name__ == "__main__":
    key = jax.random.PRNGKey(0)
    k0, k1 = jax.random.split(key)

    # Aligned case (common path: no wrapper pad / slice / cast passes).
    args = _make_inputs(k0, N=2, C=32, L=128, reduction=16)
    y = jax.block_until_ready(cbam(*args))
    assert y.shape == (2, 32, 128)
    ref = _cbam_reference(*args)
    err = float(jnp.max(jnp.abs(y - ref)))
    assert jnp.allclose(y, ref, rtol=2e-2, atol=2e-2), f"aligned mismatch: {err}"

    # Ragged case (exercises the pad + in-kernel edge-masking path).
    args2 = _make_inputs(k1, N=3, C=20, L=100, reduction=4)
    y2 = jax.block_until_ready(cbam(*args2))
    assert y2.shape == (3, 20, 100)
    ref2 = _cbam_reference(*args2)
    err2 = float(jnp.max(jnp.abs(y2 - ref2)))
    assert jnp.allclose(y2, ref2, rtol=2e-2, atol=2e-2), f"ragged mismatch: {err2}"

    print("KERNEL_OK")
</pallas_src>

<mosaic_0001>
module attributes {stable_mosaic.version = 11 : i64} {
  func.func @_cbam_kernel(%arg0: i32, %arg1: memref<2x32x128xf32, #tpu.memory_space<vmem>>, %arg2: memref<8x32xf32, #tpu.memory_space<vmem>>, %arg3: memref<32x8xf32, #tpu.memory_space<vmem>>, %arg4: memref<56x32xf32, #tpu.memory_space<vmem>>, %arg5: memref<8x1xf32, #tpu.memory_space<vmem>>, %arg6: memref<8x8xf32, #tpu.memory_space<vmem>>, %arg7: memref<1x1xf32, #tpu.memory_space<vmem>>, %arg8: memref<2x32x128xf32, #tpu.memory_space<vmem>>) attributes {dimension_semantics = [#tpu.dimension_semantics<parallel>], iteration_bounds = array<i64: 1>, scalar_prefetch = 0 : i64, scratch_operands = 0 : i64, tpu.core_type = #tpu.core_type<tc>, window_params = [{transform_indices = @transform_0, window_bounds = array<i64: 2, 32, 128>}, {pipeline_mode = #tpu.pipeline_mode<synchronous>, transform_indices = @transform_1, window_bounds = array<i64: 8, 32>}, {pipeline_mode = #tpu.pipeline_mode<synchronous>, transform_indices = @transform_2, window_bounds = array<i64: 32, 8>}, {pipeline_mode = #tpu.pipeline_mode<synchronous>, transform_indices = @transform_3, window_bounds = array<i64: 56, 32>}, {pipeline_mode = #tpu.pipeline_mode<synchronous>, transform_indices = @transform_4, window_bounds = array<i64: 8, 1>}, {pipeline_mode = #tpu.pipeline_mode<synchronous>, transform_indices = @transform_5, window_bounds = array<i64: 8, 8>}, {pipeline_mode = #tpu.pipeline_mode<synchronous>, transform_indices = @transform_6, window_bounds = array<i64: 1, 1>}, {transform_indices = @transform_7, window_bounds = array<i64: 2, 32, 128>}]} {
    %0 = tpu.iota {dimensions = array<i32: 1>} : vector<1x128xi32>
    %c0 = arith.constant 0 : index
    %c0_0 = arith.constant 0 : index
    %1 = vector.load %arg2[%c0, %c0_0] : memref<8x32xf32, #tpu.memory_space<vmem>>, vector<8x32xf32>
    %c0_1 = arith.constant 0 : index
    %c0_2 = arith.constant 0 : index
    %2 = vector.load %arg3[%c0_1, %c0_2] : memref<32x8xf32, #tpu.memory_space<vmem>>, vector<32x8xf32>
    %c0_3 = arith.constant 0 : index
    %c0_4 = arith.constant 0 : index
    %3 = vector.load %arg4[%c0_3, %c0_4] : memref<56x32xf32, #tpu.memory_space<vmem>>, vector<56x32xf32>
    %c0_5 = arith.constant 0 : index
    %c0_6 = arith.constant 0 : index
    %4 = vector.load %arg5[%c0_5, %c0_6] : memref<8x1xf32, #tpu.memory_space<vmem>>, vector<8x1xf32>
    %c0_7 = arith.constant 0 : index
    %c0_8 = arith.constant 0 : index
    %5 = vector.load %arg6[%c0_7, %c0_8] : memref<8x8xf32, #tpu.memory_space<vmem>>, vector<8x8xf32>
    %c0_9 = arith.constant 0 : index
    %c0_10 = arith.constant 0 : index
    %6 = vector.load %arg7[%c0_9, %c0_10] : memref<1x1xf32, #tpu.memory_space<vmem>>, vector<1x1xf32>
    %c0_11 = arith.constant 0 : index
    %c0_12 = arith.constant 0 : index
    %c0_13 = arith.constant 0 : index
    %7 = vector.load %arg1[%c0_11, %c0_12, %c0_13] : memref<2x32x128xf32, #tpu.memory_space<vmem>>, vector<1x32x128xf32>
    %8 = vector.shape_cast %7 : vector<1x32x128xf32> to vector<32x128xf32>
    %cst = arith.constant dense<0.000000e+00> : vector<32xf32>
    %9 = vector.multi_reduction <add>, %8, %cst [1] : vector<32x128xf32> to vector<32xf32>
    %10 = vector.shape_cast %9 : vector<32xf32> to vector<32x1xf32>
    %cst_14 = arith.constant 7.812500e-03 : f32
    %11 = vector.broadcast %cst_14 : f32 to vector<32x1xf32>
    %12 = arith.mulf %10, %11 : vector<32x1xf32>
    %cst_15 = arith.constant dense<0.000000e+00> : vector<8x1xf32>
    %13 = tpu.matmul %1, %12, %cst_15 {dimension_numbers = #tpu.dot_dimension_numbers<[1], [0], [0], [1], [0, 0, 1, 1], [], []>} : vector<8x32xf32>, vector<32x1xf32>, vector<8x1xf32> -> vector<8x1xf32>
    %cst_16 = arith.constant 0.000000e+00 : f32
    %14 = vector.broadcast %cst_16 : f32 to vector<8x1xf32>
    %15 = arith.maximumf %13, %14 : vector<8x1xf32>
    %cst_17 = arith.constant dense<0.000000e+00> : vector<32x1xf32>
    %16 = tpu.matmul %2, %15, %cst_17 {dimension_numbers = #tpu.dot_dimension_numbers<[1], [0], [0], [1], [0, 0, 1, 1], [], []>} : vector<32x8xf32>, vector<8x1xf32>, vector<32x1xf32> -> vector<32x1xf32>
    %cst_18 = arith.constant 0.000000e+00 : f32
    %17 = vector.broadcast %cst_18 : f32 to vector<32x1xf32>
    %18 = arith.subf %17, %16 : vector<32x1xf32>
    %19 = math.exp %18 : vector<32x1xf32>
    %cst_19 = arith.constant 1.000000e+00 : f32
    %20 = vector.broadcast %cst_19 : f32 to vector<32x1xf32>
    %21 = arith.addf %20, %19 : vector<32x1xf32>
    %22 = tpu.reciprocal %21 {approx = true} : vector<32x1xf32> -> vector<32x1xf32>
    %23 = vector.broadcast %22 : vector<32x1xf32> to vector<32x128xf32>
    %24 = arith.mulf %8, %23 : vector<32x128xf32>
    %cst_20 = arith.constant dense<0.000000e+00> : vector<56x128xf32>
    %25 = tpu.matmul %3, %24, %cst_20 {dimension_numbers = #tpu.dot_dimension_numbers<[1], [0], [0], [1], [0, 0, 1, 1], [], []>} : vector<56x32xf32>, vector<32x128xf32>, vector<56x128xf32> -> vector<56x128xf32>
    %26 = vector.extract_strided_slice %25 {offsets = [0, 0], sizes = [8, 128], strides = [1, 1]} : vector<56x128xf32> to vector<8x128xf32>
    %c3_i32 = arith.constant 3 : i32
    %27 = tpu.dynamic_rotate %26 by %c3_i32 dim 1 : vector<8x128xf32>, i32 -> vector<8x128xf32>
    %c3_i32_21 = arith.constant 3 : i32
    %28 = vector.broadcast %c3_i32_21 : i32 to vector<1x128xi32>
    %29 = arith.cmpi sge, %0, %28 : vector<1x128xi32>
    %cst_22 = arith.constant 0.000000e+00 : f32
    %30 = vector.shape_cast %29 : vector<1x128xi1> to vector<1x128xi1>
    %31 = vector.broadcast %30 : vector<1x128xi1> to vector<8x128xi1>
    %32 = vector.broadcast %cst_22 : f32 to vector<8x128xf32>
    %33 = arith.select %31, %27, %32 : vector<8x128xi1>, vector<8x128xf32>
    %34 = vector.extract_strided_slice %25 {offsets = [8, 0], sizes = [8, 128], strides = [1, 1]} : vector<56x128xf32> to vector<8x128xf32>
    %c2_i32 = arith.constant 2 : i32
    %35 = tpu.dynamic_rotate %34 by %c2_i32 dim 1 : vector<8x128xf32>, i32 -> vector<8x128xf32>
    %c2_i32_23 = arith.constant 2 : i32
    %36 = vector.broadcast %c2_i32_23 : i32 to vector<1x128xi32>
    %37 = arith.cmpi sge, %0, %36 : vector<1x128xi32>
    %cst_24 = arith.constant 0.000000e+00 : f32
    %38 = vector.shape_cast %37 : vector<1x128xi1> to vector<1x128xi1>
    %39 = vector.broadcast %38 : vector<1x128xi1> to vector<8x128xi1>
    %40 = vector.broadcast %cst_24 : f32 to vector<8x128xf32>
    %41 = arith.select %39, %35, %40 : vector<8x128xi1>, vector<8x128xf32>
    %42 = arith.addf %33, %41 : vector<8x128xf32>
    %43 = vector.extract_strided_slice %25 {offsets = [16, 0], sizes = [8, 128], strides = [1, 1]} : vector<56x128xf32> to vector<8x128xf32>
    %c1_i32 = arith.constant 1 : i32
    %44 = tpu.dynamic_rotate %43 by %c1_i32 dim 1 : vector<8x128xf32>, i32 -> vector<8x128xf32>
    %c1_i32_25 = arith.constant 1 : i32
    %45 = vector.broadcast %c1_i32_25 : i32 to vector<1x128xi32>
    %46 = arith.cmpi sge, %0, %45 : vector<1x128xi32>
    %cst_26 = arith.constant 0.000000e+00 : f32
    %47 = vector.shape_cast %46 : vector<1x128xi1> to vector<1x128xi1>
    %48 = vector.broadcast %47 : vector<1x128xi1> to vector<8x128xi1>
    %49 = vector.broadcast %cst_26 : f32 to vector<8x128xf32>
    %50 = arith.select %48, %44, %49 : vector<8x128xi1>, vector<8x128xf32>
    %51 = arith.addf %42, %50 : vector<8x128xf32>
    %52 = vector.extract_strided_slice %25 {offsets = [24, 0], sizes = [8, 128], strides = [1, 1]} : vector<56x128xf32> to vector<8x128xf32>
    %53 = arith.addf %51, %52 : vector<8x128xf32>
    %54 = vector.extract_strided_slice %25 {offsets = [32, 0], sizes = [8, 128], strides = [1, 1]} : vector<56x128xf32> to vector<8x128xf32>
    %c127_i32 = arith.constant 127 : i32
    %55 = tpu.dynamic_rotate %54 by %c127_i32 dim 1 : vector<8x128xf32>, i32 -> vector<8x128xf32>
    %c127_i32_27 = arith.constant 127 : i32
    %56 = vector.broadcast %c127_i32_27 : i32 to vector<1x128xi32>
    %57 = arith.cmpi slt, %0, %56 : vector<1x128xi32>
    %cst_28 = arith.constant 0.000000e+00 : f32
    %58 = vector.shape_cast %57 : vector<1x128xi1> to vector<1x128xi1>
    %59 = vector.broadcast %58 : vector<1x128xi1> to vector<8x128xi1>
    %60 = vector.broadcast %cst_28 : f32 to vector<8x128xf32>
    %61 = arith.select %59, %55, %60 : vector<8x128xi1>, vector<8x128xf32>
    %62 = arith.addf %53, %61 : vector<8x128xf32>
    %63 = vector.extract_strided_slice %25 {offsets = [40, 0], sizes = [8, 128], strides = [1, 1]} : vector<56x128xf32> to vector<8x128xf32>
    %c126_i32 = arith.constant 126 : i32
    %64 = tpu.dynamic_rotate %63 by %c126_i32 dim 1 : vector<8x128xf32>, i32 -> vector<8x128xf32>
    %c126_i32_29 = arith.constant 126 : i32
    %65 = vector.broadcast %c126_i32_29 : i32 to vector<1x128xi32>
    %66 = arith.cmpi slt, %0, %65 : vector<1x128xi32>
    %cst_30 = arith.constant 0.000000e+00 : f32
    %67 = vector.shape_cast %66 : vector<1x128xi1> to vector<1x128xi1>
    %68 = vector.broadcast %67 : vector<1x128xi1> to vector<8x128xi1>
    %69 = vector.broadcast %cst_30 : f32 to vector<8x128xf32>
    %70 = arith.select %68, %64, %69 : vector<8x128xi1>, vector<8x128xf32>
    %71 = arith.addf %62, %70 : vector<8x128xf32>
    %72 = vector.extract_strided_slice %25 {offsets = [48, 0], sizes = [8, 128], strides = [1, 1]} : vector<56x128xf32> to vector<8x128xf32>
    %c125_i32 = arith.constant 125 : i32
    %73 = tpu.dynamic_rotate %72 by %c125_i32 dim 1 : vector<8x128xf32>, i32 -> vector<8x128xf32>
    %c125_i32_31 = arith.constant 125 : i32
    %74 = vector.broadcast %c125_i32_31 : i32 to vector<1x128xi32>
    %75 = arith.cmpi slt, %0, %74 : vector<1x128xi32>
    %cst_32 = arith.constant 0.000000e+00 : f32
    %76 = vector.shape_cast %75 : vector<1x128xi1> to vector<1x128xi1>
    %77 = vector.broadcast %76 : vector<1x128xi1> to vector<8x128xi1>
    %78 = vector.broadcast %cst_32 : f32 to vector<8x128xf32>
    %79 = arith.select %77, %73, %78 : vector<8x128xi1>, vector<8x128xf32>
    %80 = arith.addf %71, %79 : vector<8x128xf32>
    %81 = vector.broadcast %4 : vector<8x1xf32> to vector<8x128xf32>
    %82 = arith.addf %80, %81 : vector<8x128xf32>
    %cst_33 = arith.constant 0.000000e+00 : f32
    %83 = vector.broadcast %cst_33 : f32 to vector<8x128xf32>
    %84 = arith.maximumf %82, %83 : vector<8x128xf32>
    %cst_34 = arith.constant dense<0.000000e+00> : vector<8x128xf32>
    %85 = tpu.matmul %5, %84, %cst_34 {dimension_numbers = #tpu.dot_dimension_numbers<[1], [0], [0], [1], [0, 0, 1, 1], [], []>} : vector<8x8xf32>, vector<8x128xf32>, vector<8x128xf32> -> vector<8x128xf32>
    %86 = vector.extract_strided_slice %85 {offsets = [0, 0], sizes = [1, 128], strides = [1, 1]} : vector<8x128xf32> to vector<1x128xf32>
    %c3_i32_35 = arith.constant 3 : i32
    %87 = tpu.dynamic_rotate %86 by %c3_i32_35 dim 1 : vector<1x128xf32>, i32 -> vector<1x128xf32>
    %c3_i32_36 = arith.constant 3 : i32
    %88 = vector.broadcast %c3_i32_36 : i32 to vector<1x128xi32>
    %89 = arith.cmpi sge, %0, %88 : vector<1x128xi32>
    %cst_37 = arith.constant 0.000000e+00 : f32
    %90 = vector.broadcast %cst_37 : f32 to vector<1x128xf32>
    %91 = arith.select %89, %87, %90 : vector<1x128xi1>, vector<1x128xf32>
    %92 = vector.extract_strided_slice %85 {offsets = [1, 0], sizes = [1, 128], strides = [1, 1]} : vector<8x128xf32> to vector<1x128xf32>
    %c2_i32_38 = arith.constant 2 : i32
    %93 = tpu.dynamic_rotate %92 by %c2_i32_38 dim 1 : vector<1x128xf32>, i32 -> vector<1x128xf32>
    %c2_i32_39 = arith.constant 2 : i32
    %94 = vector.broadcast %c2_i32_39 : i32 to vector<1x128xi32>
    %95 = arith.cmpi sge, %0, %94 : vector<1x128xi32>
    %cst_40 = arith.constant 0.000000e+00 : f32
    %96 = vector.broadcast %cst_40 : f32 to vector<1x128xf32>
    %97 = arith.select %95, %93, %96 : vector<1x128xi1>, vector<1x128xf32>
    %98 = arith.addf %91, %97 : vector<1x128xf32>
    %99 = vector.extract_strided_slice %85 {offsets = [2, 0], sizes = [1, 128], strides = [1, 1]} : vector<8x128xf32> to vector<1x128xf32>
    %c1_i32_41 = arith.constant 1 : i32
    %100 = tpu.dynamic_rotate %99 by %c1_i32_41 dim 1 : vector<1x128xf32>, i32 -> vector<1x128xf32>
    %c1_i32_42 = arith.constant 1 : i32
    %101 = vector.broadcast %c1_i32_42 : i32 to vector<1x128xi32>
    %102 = arith.cmpi sge, %0, %101 : vector<1x128xi32>
    %cst_43 = arith.constant 0.000000e+00 : f32
    %103 = vector.broadcast %cst_43 : f32 to vector<1x128xf32>
    %104 = arith.select %102, %100, %103 : vector<1x128xi1>, vector<1x128xf32>
    %105 = arith.addf %98, %104 : vector<1x128xf32>
    %106 = vector.extract_strided_slice %85 {offsets = [3, 0], sizes = [1, 128], strides = [1, 1]} : vector<8x128xf32> to vector<1x128xf32>
    %107 = arith.addf %105, %106 : vector<1x128xf32>
    %108 = vector.extract_strided_slice %85 {offsets = [4, 0], sizes = [1, 128], strides = [1, 1]} : vector<8x128xf32> to vector<1x128xf32>
    %c127_i32_44 = arith.constant 127 : i32
    %109 = tpu.dynamic_rotate %108 by %c127_i32_44 dim 1 : vector<1x128xf32>, i32 -> vector<1x128xf32>
    %c127_i32_45 = arith.constant 127 : i32
    %110 = vector.broadcast %c127_i32_45 : i32 to vector<1x128xi32>
    %111 = arith.cmpi slt, %0, %110 : vector<1x128xi32>
    %cst_46 = arith.constant 0.000000e+00 : f32
    %112 = vector.broadcast %cst_46 : f32 to vector<1x128xf32>
    %113 = arith.select %111, %109, %112 : vector<1x128xi1>, vector<1x128xf32>
    %114 = arith.addf %107, %113 : vector<1x128xf32>
    %115 = vector.extract_strided_slice %85 {offsets = [5, 0], sizes = [1, 128], strides = [1, 1]} : vector<8x128xf32> to vector<1x128xf32>
    %c126_i32_47 = arith.constant 126 : i32
    %116 = tpu.dynamic_rotate %115 by %c126_i32_47 dim 1 : vector<1x128xf32>, i32 -> vector<1x128xf32>
    %c126_i32_48 = arith.constant 126 : i32
    %117 = vector.broadcast %c126_i32_48 : i32 to vector<1x128xi32>
    %118 = arith.cmpi slt, %0, %117 : vector<1x128xi32>
    %cst_49 = arith.constant 0.000000e+00 : f32
    %119 = vector.broadcast %cst_49 : f32 to vector<1x128xf32>
    %120 = arith.select %118, %116, %119 : vector<1x128xi1>, vector<1x128xf32>
    %121 = arith.addf %114, %120 : vector<1x128xf32>
    %122 = vector.extract_strided_slice %85 {offsets = [6, 0], sizes = [1, 128], strides = [1, 1]} : vector<8x128xf32> to vector<1x128xf32>
    %c125_i32_50 = arith.constant 125 : i32
    %123 = tpu.dynamic_rotate %122 by %c125_i32_50 dim 1 : vector<1x128xf32>, i32 -> vector<1x128xf32>
    %c125_i32_51 = arith.constant 125 : i32
    %124 = vector.broadcast %c125_i32_51 : i32 to vector<1x128xi32>
    %125 = arith.cmpi slt, %0, %124 : vector<1x128xi32>
    %cst_52 = arith.constant 0.000000e+00 : f32
    %126 = vector.broadcast %cst_52 : f32 to vector<1x128xf32>
    %127 = arith.select %125, %123, %126 : vector<1x128xi1>, vector<1x128xf32>
    %128 = arith.addf %121, %127 : vector<1x128xf32>
    %129 = vector.broadcast %6 : vector<1x1xf32> to vector<1x128xf32>
    %130 = arith.addf %128, %129 : vector<1x128xf32>
    %cst_53 = arith.constant 0.000000e+00 : f32
    %131 = vector.broadcast %cst_53 : f32 to vector<1x128xf32>
    %132 = arith.subf %131, %130 : vector<1x128xf32>
    %133 = math.exp %132 : vector<1x128xf32>
    %cst_54 = arith.constant 1.000000e+00 : f32
    %134 = vector.broadcast %cst_54 : f32 to vector<1x128xf32>
    %135 = arith.addf %134, %133 : vector<1x128xf32>
    %136 = tpu.reciprocal %135 {approx = true} : vector<1x128xf32> -> vector<1x128xf32>
    %137 = vector.broadcast %136 : vector<1x128xf32> to vector<32x128xf32>
    %138 = arith.mulf %24, %137 : vector<32x128xf32>
    %c0_55 = arith.constant 0 : index
    %c0_56 = arith.constant 0 : index
    %c0_57 = arith.constant 0 : index
    %139 = vector.load %arg8[%c0_55, %c0_56, %c0_57] : memref<2x32x128xf32, #tpu.memory_space<vmem>>, vector<1x32x128xf32>
    %140 = vector.shape_cast %139 : vector<1x32x128xf32> to vector<32x128xf32>
    %141 = vector.shape_cast %138 : vector<32x128xf32> to vector<1x32x128xf32>
    tpu.vector_store %arg8[%c0_55, %c0_56, %c0_57], %141 {strides = array<i32>} : memref<2x32x128xf32, #tpu.memory_space<vmem>>, vector<1x32x128xf32>,
    %c1 = arith.constant 1 : index
    %c0_58 = arith.constant 0 : index
    %c0_59 = arith.constant 0 : index
    %142 = vector.load %arg1[%c1, %c0_58, %c0_59] : memref<2x32x128xf32, #tpu.memory_space<vmem>>, vector<1x32x128xf32>
    %143 = vector.shape_cast %142 : vector<1x32x128xf32> to vector<32x128xf32>
    %cst_60 = arith.constant dense<0.000000e+00> : vector<32xf32>
    %144 = vector.multi_reduction <add>, %143, %cst_60 [1] : vector<32x128xf32> to vector<32xf32>
    %145 = vector.shape_cast %144 : vector<32xf32> to vector<32x1xf32>
    %cst_61 = arith.constant 7.812500e-03 : f32
    %146 = vector.broadcast %cst_61 : f32 to vector<32x1xf32>
    %147 = arith.mulf %145, %146 : vector<32x1xf32>
    %cst_62 = arith.constant dense<0.000000e+00> : vector<8x1xf32>
    %148 = tpu.matmul %1, %147, %cst_62 {dimension_numbers = #tpu.dot_dimension_numbers<[1], [0], [0], [1], [0, 0, 1, 1], [], []>} : vector<8x32xf32>, vector<32x1xf32>, vector<8x1xf32> -> vector<8x1xf32>
    %cst_63 = arith.constant 0.000000e+00 : f32
    %149 = vector.broadcast %cst_63 : f32 to vector<8x1xf32>
    %150 = arith.maximumf %148, %149 : vector<8x1xf32>
    %cst_64 = arith.constant dense<0.000000e+00> : vector<32x1xf32>
    %151 = tpu.matmul %2, %150, %cst_64 {dimension_numbers = #tpu.dot_dimension_numbers<[1], [0], [0], [1], [0, 0, 1, 1], [], []>} : vector<32x8xf32>, vector<8x1xf32>, vector<32x1xf32> -> vector<32x1xf32>
    %cst_65 = arith.constant 0.000000e+00 : f32
    %152 = vector.broadcast %cst_65 : f32 to vector<32x1xf32>
    %153 = arith.subf %152, %151 : vector<32x1xf32>
    %154 = math.exp %153 : vector<32x1xf32>
    %cst_66 = arith.constant 1.000000e+00 : f32
    %155 = vector.broadcast %cst_66 : f32 to vector<32x1xf32>
    %156 = arith.addf %155, %154 : vector<32x1xf32>
    %157 = tpu.reciprocal %156 {approx = true} : vector<32x1xf32> -> vector<32x1xf32>
    %158 = vector.broadcast %157 : vector<32x1xf32> to vector<32x128xf32>
    %159 = arith.mulf %143, %158 : vector<32x128xf32>
    %cst_67 = arith.constant dense<0.000000e+00> : vector<56x128xf32>
    %160 = tpu.matmul %3, %159, %cst_67 {dimension_numbers = #tpu.dot_dimension_numbers<[1], [0], [0], [1], [0, 0, 1, 1], [], []>} : vector<56x32xf32>, vector<32x128xf32>, vector<56x128xf32> -> vector<56x128xf32>
    %161 = vector.extract_strided_slice %160 {offsets = [0, 0], sizes = [8, 128], strides = [1, 1]} : vector<56x128xf32> to vector<8x128xf32>
    %c3_i32_68 = arith.constant 3 : i32
    %162 = tpu.dynamic_rotate %161 by %c3_i32_68 dim 1 : vector<8x128xf32>, i32 -> vector<8x128xf32>
    %c3_i32_69 = arith.constant 3 : i32
    %163 = vector.broadcast %c3_i32_69 : i32 to vector<1x128xi32>
    %164 = arith.cmpi sge, %0, %163 : vector<1x128xi32>
    %cst_70 = arith.constant 0.000000e+00 : f32
    %165 = vector.shape_cast %164 : vector<1x128xi1> to vector<1x128xi1>
    %166 = vector.broadcast %165 : vector<1x128xi1> to vector<8x128xi1>
    %167 = vector.broadcast %cst_70 : f32 to vector<8x128xf32>
    %168 = arith.select %166, %162, %167 : vector<8x128xi1>, vector<8x128xf32>
    %169 = vector.extract_strided_slice %160 {offsets = [8, 0], sizes = [8, 128], strides = [1, 1]} : vector<56x128xf32> to vector<8x128xf32>
    %c2_i32_71 = arith.constant 2 : i32
    %170 = tpu.dynamic_rotate %169 by %c2_i32_71 dim 1 : vector<8x128xf32>, i32 -> vector<8x128xf32>
    %c2_i32_72 = arith.constant 2 : i32
    %171 = vector.broadcast %c2_i32_72 : i32 to vector<1x128xi32>
    %172 = arith.cmpi sge, %0, %171 : vector<1x128xi32>
    %cst_73 = arith.constant 0.000000e+00 : f32
    %173 = vector.shape_cast %172 : vector<1x128xi1> to vector<1x128xi1>
    %174 = vector.broadcast %173 : vector<1x128xi1> to vector<8x128xi1>
    %175 = vector.broadcast %cst_73 : f32 to vector<8x128xf32>
    %176 = arith.select %174, %170, %175 : vector<8x128xi1>, vector<8x128xf32>
    %177 = arith.addf %168, %176 : vector<8x128xf32>
    %178 = vector.extract_strided_slice %160 {offsets = [16, 0], sizes = [8, 128], strides = [1, 1]} : vector<56x128xf32> to vector<8x128xf32>
    %c1_i32_74 = arith.constant 1 : i32
    %179 = tpu.dynamic_rotate %178 by %c1_i32_74 dim 1 : vector<8x128xf32>, i32 -> vector<8x128xf32>
    %c1_i32_75 = arith.constant 1 : i32
    %180 = vector.broadcast %c1_i32_75 : i32 to vector<1x128xi32>
    %181 = arith.cmpi sge, %0, %180 : vector<1x128xi32>
    %cst_76 = arith.constant 0.000000e+00 : f32
    %182 = vector.shape_cast %181 : vector<1x128xi1> to vector<1x128xi1>
    %183 = vector.broadcast %182 : vector<1x128xi1> to vector<8x128xi1>
    %184 = vector.broadcast %cst_76 : f32 to vector<8x128xf32>
    %185 = arith.select %183, %179, %184 : vector<8x128xi1>, vector<8x128xf32>
    %186 = arith.addf %177, %185 : vector<8x128xf32>
    %187 = vector.extract_strided_slice %160 {offsets = [24, 0], sizes = [8, 128], strides = [1, 1]} : vector<56x128xf32> to vector<8x128xf32>
    %188 = arith.addf %186, %187 : vector<8x128xf32>
    %189 = vector.extract_strided_slice %160 {offsets = [32, 0], sizes = [8, 128], strides = [1, 1]} : vector<56x128xf32> to vector<8x128xf32>
    %c127_i32_77 = arith.constant 127 : i32
    %190 = tpu.dynamic_rotate %189 by %c127_i32_77 dim 1 : vector<8x128xf32>, i32 -> vector<8x128xf32>
    %c127_i32_78 = arith.constant 127 : i32
    %191 = vector.broadcast %c127_i32_78 : i32 to vector<1x128xi32>
    %192 = arith.cmpi slt, %0, %191 : vector<1x128xi32>
    %cst_79 = arith.constant 0.000000e+00 : f32
    %193 = vector.shape_cast %192 : vector<1x128xi1> to vector<1x128xi1>
    %194 = vector.broadcast %193 : vector<1x128xi1> to vector<8x128xi1>
    %195 = vector.broadcast %cst_79 : f32 to vector<8x128xf32>
    %196 = arith.select %194, %190, %195 : vector<8x128xi1>, vector<8x128xf32>
    %197 = arith.addf %188, %196 : vector<8x128xf32>
    %198 = vector.extract_strided_slice %160 {offsets = [40, 0], sizes = [8, 128], strides = [1, 1]} : vector<56x128xf32> to vector<8x128xf32>
    %c126_i32_80 = arith.constant 126 : i32
    %199 = tpu.dynamic_rotate %198 by %c126_i32_80 dim 1 : vector<8x128xf32>, i32 -> vector<8x128xf32>
    %c126_i32_81 = arith.constant 126 : i32
    %200 = vector.broadcast %c126_i32_81 : i32 to vector<1x128xi32>
    %201 = arith.cmpi slt, %0, %200 : vector<1x128xi32>
    %cst_82 = arith.constant 0.000000e+00 : f32
    %202 = vector.shape_cast %201 : vector<1x128xi1> to vector<1x128xi1>
    %203 = vector.broadcast %202 : vector<1x128xi1> to vector<8x128xi1>
    %204 = vector.broadcast %cst_82 : f32 to vector<8x128xf32>
    %205 = arith.select %203, %199, %204 : vector<8x128xi1>, vector<8x128xf32>
    %206 = arith.addf %197, %205 : vector<8x128xf32>
    %207 = vector.extract_strided_slice %160 {offsets = [48, 0], sizes = [8, 128], strides = [1, 1]} : vector<56x128xf32> to vector<8x128xf32>
    %c125_i32_83 = arith.constant 125 : i32
    %208 = tpu.dynamic_rotate %207 by %c125_i32_83 dim 1 : vector<8x128xf32>, i32 -> vector<8x128xf32>
    %c125_i32_84 = arith.constant 125 : i32
    %209 = vector.broadcast %c125_i32_84 : i32 to vector<1x128xi32>
    %210 = arith.cmpi slt, %0, %209 : vector<1x128xi32>
    %cst_85 = arith.constant 0.000000e+00 : f32
    %211 = vector.shape_cast %210 : vector<1x128xi1> to vector<1x128xi1>
    %212 = vector.broadcast %211 : vector<1x128xi1> to vector<8x128xi1>
    %213 = vector.broadcast %cst_85 : f32 to vector<8x128xf32>
    %214 = arith.select %212, %208, %213 : vector<8x128xi1>, vector<8x128xf32>
    %215 = arith.addf %206, %214 : vector<8x128xf32>
    %216 = vector.broadcast %4 : vector<8x1xf32> to vector<8x128xf32>
    %217 = arith.addf %215, %216 : vector<8x128xf32>
    %cst_86 = arith.constant 0.000000e+00 : f32
    %218 = vector.broadcast %cst_86 : f32 to vector<8x128xf32>
    %219 = arith.maximumf %217, %218 : vector<8x128xf32>
    %cst_87 = arith.constant dense<0.000000e+00> : vector<8x128xf32>
    %220 = tpu.matmul %5, %219, %cst_87 {dimension_numbers = #tpu.dot_dimension_numbers<[1], [0], [0], [1], [0, 0, 1, 1], [], []>} : vector<8x8xf32>, vector<8x128xf32>, vector<8x128xf32> -> vector<8x128xf32>
    %221 = vector.extract_strided_slice %220 {offsets = [0, 0], sizes = [1, 128], strides = [1, 1]} : vector<8x128xf32> to vector<1x128xf32>
    %c3_i32_88 = arith.constant 3 : i32
    %222 = tpu.dynamic_rotate %221 by %c3_i32_88 dim 1 : vector<1x128xf32>, i32 -> vector<1x128xf32>
    %c3_i32_89 = arith.constant 3 : i32
    %223 = vector.broadcast %c3_i32_89 : i32 to vector<1x128xi32>
    %224 = arith.cmpi sge, %0, %223 : vector<1x128xi32>
    %cst_90 = arith.constant 0.000000e+00 : f32
    %225 = vector.broadcast %cst_90 : f32 to vector<1x128xf32>
    %226 = arith.select %224, %222, %225 : vector<1x128xi1>, vector<1x128xf32>
    %227 = vector.extract_strided_slice %220 {offsets = [1, 0], sizes = [1, 128], strides = [1, 1]} : vector<8x128xf32> to vector<1x128xf32>
    %c2_i32_91 = arith.constant 2 : i32
    %228 = tpu.dynamic_rotate %227 by %c2_i32_91 dim 1 : vector<1x128xf32>, i32 -> vector<1x128xf32>
    %c2_i32_92 = arith.constant 2 : i32
    %229 = vector.broadcast %c2_i32_92 : i32 to vector<1x128xi32>
    %230 = arith.cmpi sge, %0, %229 : vector<1x128xi32>
    %cst_93 = arith.constant 0.000000e+00 : f32
    %231 = vector.broadcast %cst_93 : f32 to vector<1x128xf32>
    %232 = arith.select %230, %228, %231 : vector<1x128xi1>, vector<1x128xf32>
    %233 = arith.addf %226, %232 : vector<1x128xf32>
    %234 = vector.extract_strided_slice %220 {offsets = [2, 0], sizes = [1, 128], strides = [1, 1]} : vector<8x128xf32> to vector<1x128xf32>
    %c1_i32_94 = arith.constant 1 : i32
    %235 = tpu.dynamic_rotate %234 by %c1_i32_94 dim 1 : vector<1x128xf32>, i32 -> vector<1x128xf32>
    %c1_i32_95 = arith.constant 1 : i32
    %236 = vector.broadcast %c1_i32_95 : i32 to vector<1x128xi32>
    %237 = arith.cmpi sge, %0, %236 : vector<1x128xi32>
    %cst_96 = arith.constant 0.000000e+00 : f32
    %238 = vector.broadcast %cst_96 : f32 to vector<1x128xf32>
    %239 = arith.select %237, %235, %238 : vector<1x128xi1>, vector<1x128xf32>
    %240 = arith.addf %233, %239 : vector<1x128xf32>
    %241 = vector.extract_strided_slice %220 {offsets = [3, 0], sizes = [1, 128], strides = [1, 1]} : vector<8x128xf32> to vector<1x128xf32>
    %242 = arith.addf %240, %241 : vector<1x128xf32>
    %243 = vector.extract_strided_slice %220 {offsets = [4, 0], sizes = [1, 128], strides = [1, 1]} : vector<8x128xf32> to vector<1x128xf32>
    %c127_i32_97 = arith.constant 127 : i32
    %244 = tpu.dynamic_rotate %243 by %c127_i32_97 dim 1 : vector<1x128xf32>, i32 -> vector<1x128xf32>
    %c127_i32_98 = arith.constant 127 : i32
    %245 = vector.broadcast %c127_i32_98 : i32 to vector<1x128xi32>
    %246 = arith.cmpi slt, %0, %245 : vector<1x128xi32>
    %cst_99 = arith.constant 0.000000e+00 : f32
    %247 = vector.broadcast %cst_99 : f32 to vector<1x128xf32>
    %248 = arith.select %246, %244, %247 : vector<1x128xi1>, vector<1x128xf32>
    %249 = arith.addf %242, %248 : vector<1x128xf32>
    %250 = vector.extract_strided_slice %220 {offsets = [5, 0], sizes = [1, 128], strides = [1, 1]} : vector<8x128xf32> to vector<1x128xf32>
    %c126_i32_100 = arith.constant 126 : i32
    %251 = tpu.dynamic_rotate %250 by %c126_i32_100 dim 1 : vector<1x128xf32>, i32 -> vector<1x128xf32>
    %c126_i32_101 = arith.constant 126 : i32
    %252 = vector.broadcast %c126_i32_101 : i32 to vector<1x128xi32>
    %253 = arith.cmpi slt, %0, %252 : vector<1x128xi32>
    %cst_102 = arith.constant 0.000000e+00 : f32
    %254 = vector.broadcast %cst_102 : f32 to vector<1x128xf32>
    %255 = arith.select %253, %251, %254 : vector<1x128xi1>, vector<1x128xf32>
    %256 = arith.addf %249, %255 : vector<1x128xf32>
    %257 = vector.extract_strided_slice %220 {offsets = [6, 0], sizes = [1, 128], strides = [1, 1]} : vector<8x128xf32> to vector<1x128xf32>
    %c125_i32_103 = arith.constant 125 : i32
    %258 = tpu.dynamic_rotate %257 by %c125_i32_103 dim 1 : vector<1x128xf32>, i32 -> vector<1x128xf32>
    %c125_i32_104 = arith.constant 125 : i32
    %259 = vector.broadcast %c125_i32_104 : i32 to vector<1x128xi32>
    %260 = arith.cmpi slt, %0, %259 : vector<1x128xi32>
    %cst_105 = arith.constant 0.000000e+00 : f32
    %261 = vector.broadcast %cst_105 : f32 to vector<1x128xf32>
    %262 = arith.select %260, %258, %261 : vector<1x128xi1>, vector<1x128xf32>
    %263 = arith.addf %256, %262 : vector<1x128xf32>
    %264 = vector.broadcast %6 : vector<1x1xf32> to vector<1x128xf32>
    %265 = arith.addf %263, %264 : vector<1x128xf32>
    %cst_106 = arith.constant 0.000000e+00 : f32
    %266 = vector.broadcast %cst_106 : f32 to vector<1x128xf32>
    %267 = arith.subf %266, %265 : vector<1x128xf32>
    %268 = math.exp %267 : vector<1x128xf32>
    %cst_107 = arith.constant 1.000000e+00 : f32
    %269 = vector.broadcast %cst_107 : f32 to vector<1x128xf32>
    %270 = arith.addf %269, %268 : vector<1x128xf32>
    %271 = tpu.reciprocal %270 {approx = true} : vector<1x128xf32> -> vector<1x128xf32>
    %272 = vector.broadcast %271 : vector<1x128xf32> to vector<32x128xf32>
    %273 = arith.mulf %159, %272 : vector<32x128xf32>
    %c1_108 = arith.constant 1 : index
    %c0_109 = arith.constant 0 : index
    %c0_110 = arith.constant 0 : index
    %274 = vector.load %arg8[%c1_108, %c0_109, %c0_110] : memref<2x32x128xf32, #tpu.memory_space<vmem>>, vector<1x32x128xf32>
    %275 = vector.shape_cast %274 : vector<1x32x128xf32> to vector<32x128xf32>
    %276 = vector.shape_cast %273 : vector<32x128xf32> to vector<1x32x128xf32>
    tpu.vector_store %arg8[%c1_108, %c0_109, %c0_110], %276 {strides = array<i32>} : memref<2x32x128xf32, #tpu.memory_space<vmem>>, vector<1x32x128xf32>,
    return
  }
  func.func @transform_0(%arg0: i32) -> (i32, i32, i32) {
    %c0_i32 = arith.constant 0 : i32
    %c0_i32_0 = arith.constant 0 : i32
    %c0_i32_1 = arith.constant 0 : i32
    return %arg0, %c0_i32, %c0_i32_0 : i32, i32, i32
  }
  func.func @transform_1(%arg0: i32) -> (i32, i32) {
    %c0_i32 = arith.constant 0 : i32
    %c0_i32_0 = arith.constant 0 : i32
    %c0_i32_1 = arith.constant 0 : i32
    return %c0_i32, %c0_i32_0 : i32, i32
  }
  func.func @transform_2(%arg0: i32) -> (i32, i32) {
    %c0_i32 = arith.constant 0 : i32
    %c0_i32_0 = arith.constant 0 : i32
    %c0_i32_1 = arith.constant 0 : i32
    return %c0_i32, %c0_i32_0 : i32, i32
  }
  func.func @transform_3(%arg0: i32) -> (i32, i32) {
    %c0_i32 = arith.constant 0 : i32
    %c0_i32_0 = arith.constant 0 : i32
    %c0_i32_1 = arith.constant 0 : i32
    return %c0_i32, %c0_i32_0 : i32, i32
  }
  func.func @transform_4(%arg0: i32) -> (i32, i32) {
    %c0_i32 = arith.constant 0 : i32
    %c0_i32_0 = arith.constant 0 : i32
    %c0_i32_1 = arith.constant 0 : i32
    return %c0_i32, %c0_i32_0 : i32, i32
  }
  func.func @transform_5(%arg0: i32) -> (i32, i32) {
    %c0_i32 = arith.constant 0 : i32
    %c0_i32_0 = arith.constant 0 : i32
    %c0_i32_1 = arith.constant 0 : i32
    return %c0_i32, %c0_i32_0 : i32, i32
  }
  func.func @transform_6(%arg0: i32) -> (i32, i32) {
    %c0_i32 = arith.constant 0 : i32
    %c0_i32_0 = arith.constant 0 : i32
    %c0_i32_1 = arith.constant 0 : i32
    return %c0_i32, %c0_i32_0 : i32, i32
  }
  func.func @transform_7(%arg0: i32) -> (i32, i32, i32) {
    %c0_i32 = arith.constant 0 : i32
    %c0_i32_0 = arith.constant 0 : i32
    %c0_i32_1 = arith.constant 0 : i32
    return %arg0, %c0_i32, %c0_i32_0 : i32, i32, i32
  }
}

</mosaic_0001>

<bundles_post_ra>
// kernel: cbam.1
= control target key start
LH: loop header
LB: loop body
LE: loop exit
PB: predicated region body
PF: predicated region fallthrough
CT: control target
= control target key end

     0   :  { %s1780_s0 = inlined_call_operand.vmem [shape: f32[2,32,128], index: 0, kind: input, shape index: {}]   ;;  %s1781_s1 = inlined_call_operand.vmem [shape: f32[8,32], index: 1, kind: input, shape index: {}]   ;;  %s1782_s2 = inlined_call_operand.vmem [shape: f32[32,8], index: 2, kind: input, shape index: {}]   ;;  %s1783_s3 = inlined_call_operand.vmem [shape: f32[56,32], index: 3, kind: input, shape index: {}]   ;;  %s1784_s4 = inlined_call_operand.vmem [shape: f32[8,1], index: 4, kind: input, shape index: {}]   ;;  %s1785_s5 = inlined_call_operand.vmem [shape: f32[8,8], index: 5, kind: input, shape index: {}]   ;;  %s1786_s6 = inlined_call_operand.<no memory space> [shape: f32[1,1], index: 6, kind: input, shape index: {}]   ;;  %s1787_s7 = inlined_call_operand.hbm [shape: f32[2,32,128], index: 7, kind: output, shape index: {}]  }
   0x1   :  { %v12_v0 = vstv %s1786_s6 }
   0x2   :  { %13 = vst [vmem:[#allocation2] sm:$0x1] %v12_v0 }
   0x3   :  { %v1415_v1 = vld [vmem:[%s1780_s0 + $0x10] sm:$0xff]  ;;  %v1420_v2 = vld [vmem:[%s1780_s0] sm:$0xff] }
   0x4   :  { %54 = vadd.xlane.f32.xlu1 %v1415_v1  ;;  %50 = vadd.xlane.f32.xlu0 %v1420_v2 }
   0x5   :  { %14 = vsyncpa [#allocation4], 0  ;;  %v1427_v3 = vld [vmem:[%s1780_s0 + $0x18] sm:$0xff]  ;;  %v1432_v4 = vld [vmem:[%s1780_s0 + $0x8] sm:$0xff]  ;;  %v1356_v5 = vmov 0.0|0.0   ;;  %vm1357_vm0 = vmmov 0  }
   0x6   :  { %1253 = vmatprep.subr.bf16.mxu1 %v1356_v5  ;;  %v1358_v6 = vmov 0.0   ;;  %v1446_v17 = vld [vmem:[%s1781_s1] sm:$0xff]  ;;  %vm62_vm1 = vcmask 261120   ;;  %vm137_vm2 = vcmask 64512   ;;  %v1460_v22 = vld [vmem:[%s1782_s2 + $0x8] sm:$0xff]  ;;  %v1465_v23 = vld [vmem:[%s1782_s2 + $0x10] sm:$0xff] }
   0x7   :  { %1155 = vmatprep.mubr.msk.f32.mxu1 %vm1357_vm0, %v1358_v6  ;;  %1195 = vmatprep.subr.mxu0 %v1358_v6  ;;  %v1453_v18 = vld [vmem:[%s1782_s2] sm:$0xff]  ;;  %v1475_v24 = vld [vmem:[%s1782_s2 + $0x18] sm:$0xff]  ;;  %v1359_v25 = vmov 0   ;;  %v1484_v50 = vld [vmem:[%s1780_s0 + $0x28] sm:$0xff]  ;;  %s1360_s15 = smov 3   ;;  %s1361_s1 = smov 2  }
   0x8   :  { %56 = vadd.xlane.f32.xlu1 %v1427_v3  ;;  %52 = vadd.xlane.f32.xlu0 %v1432_v4  ;;  %v1490_v51 = vld [vmem:[%s1780_s0 + $0x20] sm:$0xff]  ;;  %v1495_v52 = vld [vmem:[%s1780_s0 + $0x30] sm:$0xff]  ;;  %v1502_v53 = vld [vmem:[%s1780_s0 + $0x38] sm:$0xff]  ;;  %s1362_s16 = smov 1   ;;  %s1363_s18 = smov 127  }
   0x9   :  { %1197 = vmatprep.mubr.msk.f32.mxu0 %vm1357_vm0, %v1358_v6  ;;  %1291 = vset.pattern.permute.xlu1 %v1359_v25  ;;  %v1525_v0 = vld [vmem:[%s1783_s3] sm:$0xff]  ;;  %s1364_s2 = smov 126   ;;  %s1365_s19 = smov 125  }
   0xa   :  { %1290 = vset.pattern.permute.xlu0 %v1359_v25 }
  0x91   :  { %v55_v7 = vpop.xlane.xlu1 %54  ;;  %v51_v8 = vpop.xlane.xlu0 %50 }
  0x92   :  { %v58_v11 = vmul.f32 0.0078125, %v51_v8  ;;  %v60_v13 = vmul.f32 0.0078125, %v55_v7  ;;  %v1571_v7 = vld [vmem:[%s1783_s3 + $0x28] sm:$0xff]  ;;  %v1580_v8 = vld [vmem:[%s1783_s3 + $0x30] sm:$0xff] }
  0x95   :  { %v57_v9 = vpop.xlane.xlu1 %56  ;;  %v53_v10 = vpop.xlane.xlu0 %52 }
  0x96   :  { %v59_v12 = vmul.f32 0.0078125, %v53_v10  ;;  %v61_v14 = vmul.f32 0.0078125, %v57_v9 }
  0x98   :  { %v1254_v15 = vpack.c.bf16 %v59_v12, %v58_v11  ;;  %v1257_v16 = vpack.c.bf16 %v61_v14, %v60_v13 }
  0x9a   :  { %1255 = vmatpush3.bf16.msra.mxu1 %v1254_v15  ;;  %v43_v15 = vld [vmem:[%s1784_s4] sm:$0xff] }
  0x9b   :  { %1256 = vmatprep.subr.bf16.mxu1 %v1356_v5 }
  0x9e   :  { %1258 = vmatpush3.bf16.msra.mxu1 %v1257_v16 }
  0xa1   :  { %1156 = vmatmul.mubr.msk.f32.vlgmr.msra.gmra.mrb[0].mxu1 %vm62_vm1, %v1446_v17 }
  0xa2   :  { %1160 = vmatprep.mubr.msk.f32.mxu1 %vm137_vm2, %v1453_v18 }
 0x174   :  { %v132_v19 = vpop.f32.mrb[0].mxu1 }
 0x175   :  { %v136_v20 = vmax.f32 %v132_v19, 0.0  ;;  %v1157_v21 = vpop.f32.mrb[1].mxu1 }
 0x177   :  { %1158 = vmatprep.subr.mxu1 %v136_v20 }
 0x178   :  { %1159 = vmatpush3.msra.mxu1 %v136_v20 }
 0x179   :  { %1161 = vmatmul.mubr.msk.f32.vlgmr.msra.gmra.mrb[2].mxu1 %vm137_vm2, %v1460_v22  ;;  %1259 = vmatprep.subr.bf16.mxu1 %v1356_v5 }
 0x17a   :  { %1163 = vmatprep.mubr.msk.f32.mxu1 %vm137_vm2, %v1465_v23 }
 0x17d   :  { %1164 = vmatmul.mubr.msk.f32.gmra.mrb[4].mxu1 %vm137_vm2, %v1475_v24 }
 0x17e   :  { %1174 = vmatprep.mubr.msk.f32.mxu1 %vm1357_vm0, %v1358_v6 }
 0x24c   :  { %v1162_v26 = vpop.f32.mrb[2].mxu1 }
 0x24d   :  { %v236_v27 = vsub.f32 0.0, %v1162_v26  ;;  %v216_v28 = vpop.f32.mrb[3].mxu1 }
 0x24e   :  { %v235_v29 = vsub.f32 0.0, %v216_v28 }
 0x24f   :  { %v241_v30 = vmul.f32 1.442695, %v236_v27 }
 0x250   :  { %v239_v31 = vmul.f32 1.442695, %v235_v29  ;;  %v1165_v32 = vpop.f32.mrb[4].mxu1 }
 0x251   :  { %1292 = vpow2.f32 %v241_v30  ;;  %v238_v33 = vsub.f32 0.0, %v1165_v32  ;;  %v226_v34 = vpop.f32.mrb[5].mxu1  ;;  %v29_v32 = vlaneseq }
 0x252   :  { %1294 = vpow2.f32 %v239_v31  ;;  %v237_v35 = vsub.f32 0.0, %v226_v34 }
 0x253   :  { %v245_v36 = vmul.f32 1.442695, %v238_v33 }
 0x254   :  { %v243_v37 = vmul.f32 1.442695, %v237_v35  ;;  %v1596_v35 = vand.u32 127, %v29_v32 }
 0x255   :  { %1296 = vpow2.f32 %v245_v36 }
 0x256   :  { %1298 = vpow2.f32 %v243_v37  ;;  %vm408_vm3 = vcmp.ge.s32.totalorder %v1596_v35, 2  ;;  %vm402_vm4 = vcmp.ge.s32.totalorder %v1596_v35, 3  ;;  %vm415_vm5 = vcmp.ge.s32.totalorder %v1596_v35, 1 }
 0x257   :  { %vm423_vm6 = vcmp.lt.s32.totalorder %v1596_v35, 127  ;;  %vm430_vm7 = vcmp.lt.s32.totalorder %v1596_v35, 126  ;;  %vm437_vm8 = vcmp.lt.s32.totalorder %v1596_v35, 125 }
 0x25b   :  { %v1293_v38 = vpop.eup %1292 }
 0x25c   :  { %v1295_v39 = vpop.eup %1294  ;;  %v248_v40 = vadd.f32 1.0, %v1293_v38 }
 0x25d   :  { %v247_v41 = vadd.f32 1.0, %v1295_v39 }
 0x25e   :  { %1300 = vrcp.f32 %v248_v40 }
 0x25f   :  { %v1297_v42 = vpop.eup %1296  ;;  %1302 = vrcp.f32 %v247_v41 }
 0x260   :  { %v1299_v43 = vpop.eup %1298  ;;  %v250_v45 = vadd.f32 1.0, %v1297_v42 }
 0x261   :  { %v249_v44 = vadd.f32 1.0, %v1299_v43 }
 0x263   :  { %1304 = vrcp.f32 %v249_v44 }
 0x264   :  { %1306 = vrcp.f32 %v250_v45 }
 0x268   :  { %v1301_v46 = vpop.eup %1300 }
 0x269   :  { %v1303_v47 = vpop.eup %1302  ;;  %262 = vperm.xlu1 %1291, %v1301_v46  }
 0x26a   :  { %257 = vperm.xlu0 %1290, %v1303_v47  }
 0x26d   :  { %v1305_v48 = vpop.eup %1304 }
 0x26e   :  { %267 = vperm.xlu1 %1291, %v1305_v48   ;;  %v1307_v49 = vpop.eup %1306 }
 0x272   :  { %272 = vperm.xlu1 %1291, %v1307_v49  }
 0x289   :  { %593 = vadd.xlane.f32.xlu0 %v1484_v50 }
 0x28d   :  { %595 = vadd.xlane.f32.xlu0 %v1495_v52 }
 0x291   :  { %597 = vadd.xlane.f32.xlu0 %v1502_v53 }
 0x296   :  { %591 = vadd.xlane.f32.xlu1 %v1490_v51 }
 0x2e8   :  { %v263_v54 = vpop.permute.xlu1 %262 }
 0x2e9   :  { %v1506_v55 = vmul.f32 %v263_v54, %v1432_v4  ;;  %v258_v56 = vpop.permute.xlu0 %257  ;;  %v1562_v4 = vld [vmem:[%s1783_s3 + $0x20] sm:$0xff] }
 0x2ea   :  { %v1509_v57 = vmul.f32 %v258_v56, %v1420_v2  ;;  %v1544_v2 = vld [vmem:[%s1783_s3 + $0x10] sm:$0xff] }
 0x2ec   :  { %v1260_v58 = vpack.c.bf16 %v1506_v55, %v1509_v57 }
 0x2ed   :  { %v268_v59 = vpop.permute.xlu1 %267 }
 0x2ee   :  { %1261 = vmatpush3.bf16.msra.mxu1 %v1260_v58  ;;  %v1515_v61 = vmul.f32 %v268_v59, %v1415_v1  ;;  %v1535_v1 = vld [vmem:[%s1783_s3 + $0x8] sm:$0xff] }
 0x2ef   :  { %1262 = vmatprep.subr.bf16.mxu1 %v1356_v5 }
 0x2f1   :  { %v273_v60 = vpop.permute.xlu1 %272 }
 0x2f2   :  { %v1518_v62 = vmul.f32 %v273_v60, %v1427_v3  ;;  %v1553_v3 = vld [vmem:[%s1783_s3 + $0x18] sm:$0xff] }
 0x2f4   :  { %v1263_v63 = vpack.c.bf16 %v1518_v62, %v1515_v61 }
 0x2f6   :  { %1264 = vmatpush3.bf16.msra.mxu1 %v1263_v63 }
 0x2f7   :  { %1248 = vmatprep.subr.mxu1 %v1358_v6 }
 0x2f9   :  { %1175 = vmatmul.mubr.msk.f32.vlgmr.msra.gmra.mrb[6].mxu1 %vm62_vm1, %v1525_v0 }
 0x2fa   :  { %1177 = vmatprep.mubr.msk.f32.mxu1 %vm1357_vm0, %v1358_v6 }
 0x2fd   :  { %1178 = vmatmul.mubr.msk.f32.gmra.mrb[8].mxu1 %vm62_vm1, %v1535_v1 }
 0x2fe   :  { %1180 = vmatprep.mubr.msk.f32.mxu1 %vm1357_vm0, %v1358_v6 }
 0x301   :  { %1181 = vmatmul.mubr.msk.f32.gmra.mrb[10].mxu1 %vm62_vm1, %v1544_v2 }
 0x302   :  { %1183 = vmatprep.mubr.msk.f32.mxu1 %vm1357_vm0, %v1358_v6 }
 0x305   :  { %1184 = vmatmul.mubr.msk.f32.gmra.mrb[12].mxu1 %vm62_vm1, %v1553_v3 }
 0x306   :  { %1186 = vmatprep.mubr.msk.f32.mxu1 %vm1357_vm0, %v1358_v6 }
 0x309   :  { %1187 = vmatmul.mubr.msk.f32.gmra.mrb[14].mxu1 %vm62_vm1, %v1562_v4 }
 0x30a   :  { %1189 = vmatprep.mubr.msk.f32.mxu1 %vm1357_vm0, %v1358_v6 }
 0x30d   :  { %1190 = vmatmul.mubr.msk.f32.gmra.mrb[16].mxu1 %vm62_vm1, %v1571_v7 }
 0x30e   :  { %1192 = vmatprep.mubr.msk.f32.mxu1 %vm1357_vm0, %v1358_v6 }
 0x311   :  { %1193 = vmatmul.mubr.msk.f32.gmra.mrb[18].mxu1 %vm62_vm1, %v1580_v8 }
 0x312   :  { %1250 = vmatprep.mubr.msk.f32.mxu1 %vm1357_vm0, %v1358_v6 }
 0x316   :  { %v594_v31 = vpop.xlane.xlu0 %593 }
 0x317   :  { %v600_v63 = vmul.f32 0.0078125, %v594_v31 }
 0x31a   :  { %v596_v34 = vpop.xlane.xlu0 %595 }
 0x31e   :  { %v598_v37 = vpop.xlane.xlu0 %597 }
 0x323   :  { %v592_v29 = vpop.xlane.xlu1 %591 }
 0x324   :  { %v599_v60 = vmul.f32 0.0078125, %v592_v29 }
 0x3cc   :  { %v366_v9 = vpop.f32.mrb[6].mxu1 }
 0x3cd   :  { %400 = vrot.lane.b32.xlu1 %v366_v9, %s1360_s15  ;;  %v1176_v10 = vpop.f32.mrb[7].mxu1 }
 0x3d0   :  { %v371_v11 = vpop.f32.mrb[8].mxu1 }
 0x3d1   :  { %406 = vrot.lane.b32.xlu1 %v371_v11, %s1361_s1  ;;  %v1179_v12 = vpop.f32.mrb[9].mxu1  ;;  %v1622_v11 = vld [vmem:[%s1785_s5] sm:$0xff]  ;;  %s1366_s5 = smov [#allocation3]  }
 0x3d2   :  { %v1266_v12 = vpack.c.bf16 %v600_v63, %v599_v60  ;;  %s1060_s21 = sshll.u32 %s1366_s5, 4  ;;  %s1757_s21 = int_to_ptr.vmem [resolvable:$true] %s1060_s21 }
 0x3d3   :  { %s1332_s22 = scalar_lea.vmem %s1757_s21, 1024  ;;  %p1337_p1 = scmp.lt.s32.totalorder %s1757_s21, %s1757_s21 }
 0x3d4   :  { %v376_v13 = vpop.f32.mrb[10].mxu1  ;;  %p1333_p0 = scmp.ne.s32.totalorder %s1757_s21, %s1332_s22  ;;  %p1338_p2 = scmp.lt.s32.totalorder %s1332_s22, %s1332_s22 }
 0x3d5   :  { %413 = vrot.lane.b32.xlu1 %v376_v13, %s1362_s16  ;;  %v1182_v14 = vpop.f32.mrb[11].mxu1  ;;  %v601_v13 = vmul.f32 0.0078125, %v596_v34 }
 0x3d6   :  { %v602_v14 = vmul.f32 0.0078125, %v598_v37  ;;  %p1339_p3 = por %p1338_p2, %p1337_p1 }
 0x3d8   :  { %v381_v16 = vpop.f32.mrb[12].mxu1  ;;  %p1340_p4 = pnand %p1339_p3, %p1333_p0 }
 0x3d9   :  { %444 = vperm.xlu1 %1291, %v43_v15   ;;  %v1185_v19 = vpop.f32.mrb[13].mxu1  ;;  %v1269_v15 = vpack.c.bf16 %v602_v14, %v601_v13 }
 0x3dc   :  { %v386_v20 = vpop.f32.mrb[14].mxu1 }
 0x3dd   :  { %421 = vrot.lane.b32.xlu0 %v386_v20, %s1363_s18  ;;  %v1188_v21 = vpop.f32.mrb[15].mxu1 }
 0x3e0   :  { %v391_v25 = vpop.f32.mrb[16].mxu1 }
 0x3e1   :  { %v1191_v26 = vpop.f32.mrb[17].mxu1  ;;  %428 = vrot.lane.b32.xlu1 %v391_v25, %s1364_s2 }
 0x3e4   :  { %v396_v27 = vpop.f32.mrb[18].mxu1 }
 0x3e5   :  { %v1194_v28 = vpop.f32.mrb[19].mxu1  ;;  %435 = vrot.lane.b32.xlu1 %v396_v27, %s1365_s19 }
 0x43f   :  { %v401_v30 = vpop.permute.xlu1 %400 }
 0x440   :  { %v405_v39 = vsel %vm402_vm4, %v401_v30, 0.0 }
 0x443   :  { %v407_v33 = vpop.permute.xlu1 %406 }
 0x444   :  { %v411_v38 = vsel %vm408_vm3, %v407_v33, 0.0 }
 0x445   :  { %v412_v41 = vadd.f32 %v411_v38, %v405_v39 }
 0x447   :  { %v414_v36 = vpop.permute.xlu1 %413 }
 0x448   :  { %v418_v40 = vsel %vm415_vm5, %v414_v36, 0.0 }
 0x449   :  { %v419_v42 = vadd.f32 %v418_v40, %v412_v41 }
 0x44b   :  { %v420_v46 = vadd.f32 %v419_v42, %v381_v16 }
 0x44f   :  { %v422_v43 = vpop.permute.xlu0 %421 }
 0x450   :  { %v426_v45 = vsel %vm423_vm6, %v422_v43, 0.0 }
 0x451   :  { %v427_v49 = vadd.f32 %v426_v45, %v420_v46 }
 0x458   :  { %v1608_v44 = vpop.permute.xlu1 %444 }
 0x45c   :  { %v429_v47 = vpop.permute.xlu1 %428 }
 0x45d   :  { %v433_v48 = vsel %vm430_vm7, %v429_v47, 0.0 }
 0x45e   :  { %v434_v54 = vadd.f32 %v433_v48, %v427_v49 }
 0x460   :  { %v436_v56 = vpop.permute.xlu1 %435 }
 0x461   :  { %v440_v58 = vsel %vm437_vm8, %v436_v56, 0.0 }
 0x462   :  { %v441_v59 = vadd.f32 %v440_v58, %v434_v54 }
 0x464   :  { %v447_v9 = vadd.f32 %v1608_v44, %v441_v59 }
 0x466   :  { %v448_v10 = vmax.f32 %v447_v9, 0.0 }
 0x468   :  { %1196 = vmatpush3.msra.mxu0 %v448_v10 }
 0x469   :  { %1198 = vmatmul.mubr.msk.f32.vlgmr.msra.gmra.mrb[0].mxu0 %vm137_vm2, %v1622_v11  ;;  %1265 = vmatprep.subr.bf16.mxu0 %v1356_v5 }
 0x46a   :  { %1267 = vmatpush3.bf16.msra.mxu0 %v1266_v12  ;;  %1208 = vmatprep.mubr.msk.f32.mxu0 %vm1357_vm0, %v1358_v6 }
 0x46b   :  { %1268 = vmatprep.subr.bf16.mxu0 %v1356_v5 }
 0x46e   :  { %1270 = vmatpush3.bf16.msra.mxu0 %v1269_v15  ;;  %v45_v15 = vld [vmem:[#allocation2] sm:$0x1] }
 0x471   :  { %1209 = vmatmul.mubr.msk.f32.vlgmr.msra.gmra.mrb[2].mxu0 %vm62_vm1, %v1446_v17 }
 0x472   :  { %1213 = vmatprep.mubr.msk.f32.mxu0 %vm137_vm2, %v1453_v18 }
 0x53c   :  { %v1634_v16 = vpop.f32.mrb[0].mxu0 }
 0x53d   :  { %v1199_v19 = vpop.f32.mrb[1].mxu0  ;;  %v532_v13 = vrot.slane %v1634_v16, 2  ;;  %v526_v14 = vrot.slane %v1634_v16, 1 }
 0x53e   :  { %v541_v19 = vrot.slane %v1634_v16, 4 }
 0x544   :  { %v669_v20 = vpop.f32.mrb[2].mxu0 }
 0x545   :  { %v673_v21 = vmax.f32 %v669_v20, 0.0  ;;  %v1210_v25 = vpop.f32.mrb[3].mxu0 }
 0x547   :  { %1211 = vmatprep.subr.mxu0 %v673_v21 }
 0x548   :  { %1212 = vmatpush3.msra.mxu0 %v673_v21 }
 0x549   :  { %1214 = vmatmul.mubr.msk.f32.vlgmr.msra.gmra.mrb[4].mxu0 %vm137_vm2, %v1460_v22  ;;  %1271 = vmatprep.subr.bf16.mxu0 %v1356_v5 }
 0x54a   :  { %1216 = vmatprep.mubr.msk.f32.mxu0 %vm137_vm2, %v1465_v23 }
 0x54d   :  { %1217 = vmatmul.mubr.msk.f32.gmra.mrb[6].mxu0 %vm137_vm2, %v1475_v24 }
 0x54e   :  { %1227 = vmatprep.mubr.msk.f32.mxu0 %vm1357_vm0, %v1358_v6 }
 0x61c   :  { %v1215_v17 = vpop.f32.mrb[4].mxu0 }
 0x61d   :  { %v760_v18 = vsub.f32 0.0, %v1215_v17  ;;  %v740_v26 = vpop.f32.mrb[5].mxu0 }
 0x61e   :  { %v759_v27 = vsub.f32 0.0, %v740_v26 }
 0x61f   :  { %v765_v28 = vmul.f32 1.442695, %v760_v18 }
 0x620   :  { %v763_v29 = vmul.f32 1.442695, %v759_v27  ;;  %v1218_v30 = vpop.f32.mrb[6].mxu0 }
 0x621   :  { %1308 = vpow2.f32 %v765_v28  ;;  %v762_v22 = vsub.f32 0.0, %v1218_v30  ;;  %v750_v31 = vpop.f32.mrb[7].mxu0 }
 0x622   :  { %1310 = vpow2.f32 %v763_v29  ;;  %v761_v33 = vsub.f32 0.0, %v750_v31 }
 0x623   :  { %v769_v34 = vmul.f32 1.442695, %v762_v22 }
 0x624   :  { %v767_v23 = vmul.f32 1.442695, %v761_v33 }
 0x625   :  { %1312 = vpow2.f32 %v769_v34 }
 0x626   :  { %1314 = vpow2.f32 %v767_v23 }
 0x62b   :  { %v1309_v24 = vpop.eup %1308 }
 0x62c   :  { %v1311_v36 = vpop.eup %1310  ;;  %v772_v37 = vadd.f32 1.0, %v1309_v24 }
 0x62d   :  { %v771_v38 = vadd.f32 1.0, %v1311_v36 }
 0x62e   :  { %1316 = vrcp.f32 %v772_v37 }
 0x62f   :  { %v1313_v39 = vpop.eup %1312  ;;  %1318 = vrcp.f32 %v771_v38 }
 0x630   :  { %v1315_v40 = vpop.eup %1314  ;;  %v774_v41 = vadd.f32 1.0, %v1313_v39 }
 0x631   :  { %v773_v42 = vadd.f32 1.0, %v1315_v40 }
 0x633   :  { %1320 = vrcp.f32 %v773_v42 }
 0x634   :  { %1322 = vrcp.f32 %v774_v41 }
 0x638   :  { %v1317_v43 = vpop.eup %1316 }
 0x639   :  { %786 = vperm.xlu1 %1291, %v1317_v43   ;;  %v1319_v45 = vpop.eup %1318 }
 0x63d   :  { %v1321_v46 = vpop.eup %1320  ;;  %781 = vperm.xlu1 %1291, %v1319_v45  }
 0x63e   :  { %v1323_v47 = vpop.eup %1322  ;;  %791 = vperm.xlu0 %1290, %v1321_v46  }
 0x641   :  { %796 = vperm.xlu1 %1291, %v1323_v47   ;;  %v553_v47 = vrot.slane %v1634_v16, 6 }
 0x6b8   :  { %v787_v48 = vpop.permute.xlu1 %786 }
 0x6b9   :  { %v1646_v54 = vmul.f32 %v1484_v50, %v787_v48 }
 0x6bc   :  { %v782_v49 = vpop.permute.xlu1 %781 }
 0x6bd   :  { %v1649_v56 = vmul.f32 %v1490_v51, %v782_v49  ;;  %v792_v58 = vpop.permute.xlu0 %791 }
 0x6be   :  { %v1654_v63 = vmul.f32 %v1495_v52, %v792_v58 }
 0x6bf   :  { %v1272_v59 = vpack.c.bf16 %v1646_v54, %v1649_v56 }
 0x6c0   :  { %v797_v60 = vpop.permute.xlu1 %796 }
 0x6c1   :  { %v1657_v9 = vmul.f32 %v1502_v53, %v797_v60  ;;  %1273 = vmatpush3.bf16.msra.mxu0 %v1272_v59 }
 0x6c2   :  { %1274 = vmatprep.subr.bf16.mxu0 %v1356_v5 }
 0x6c3   :  { %v1275_v50 = vpack.c.bf16 %v1657_v9, %v1654_v63 }
 0x6c5   :  { %1276 = vmatpush3.bf16.msra.mxu0 %v1275_v50 }
 0x6c8   :  { %1228 = vmatmul.mubr.msk.f32.vlgmr.msra.gmra.mrb[8].mxu0 %vm62_vm1, %v1525_v0 }
 0x6c9   :  { %1230 = vmatprep.mubr.msk.f32.mxu0 %vm1357_vm0, %v1358_v6 }
 0x6cc   :  { %1231 = vmatmul.mubr.msk.f32.gmra.mrb[10].mxu0 %vm62_vm1, %v1535_v1 }
 0x6cd   :  { %1233 = vmatprep.mubr.msk.f32.mxu0 %vm1357_vm0, %v1358_v6 }
 0x6d0   :  { %1234 = vmatmul.mubr.msk.f32.gmra.mrb[12].mxu0 %vm62_vm1, %v1544_v2 }
 0x6d1   :  { %1236 = vmatprep.mubr.msk.f32.mxu0 %vm1357_vm0, %v1358_v6 }
 0x6d4   :  { %1237 = vmatmul.mubr.msk.f32.gmra.mrb[14].mxu0 %vm62_vm1, %v1553_v3 }
 0x6d5   :  { %1239 = vmatprep.mubr.msk.f32.mxu0 %vm1357_vm0, %v1358_v6 }
 0x6d8   :  { %1240 = vmatmul.mubr.msk.f32.gmra.mrb[16].mxu0 %vm62_vm1, %v1562_v4 }
 0x6d9   :  { %1242 = vmatprep.mubr.msk.f32.mxu0 %vm1357_vm0, %v1358_v6 }
 0x6dc   :  { %1243 = vmatmul.mubr.msk.f32.gmra.mrb[18].mxu0 %vm62_vm1, %v1571_v7 }
 0x6dd   :  { %1245 = vmatprep.mubr.msk.f32.mxu0 %vm1357_vm0, %v1358_v6 }
 0x6e0   :  { %1246 = vmatmul.mubr.msk.f32.gmra.mrb[20].mxu0 %vm62_vm1, %v1580_v8 }
 0x79b   :  { %v869_v5 = vpop.f32.mrb[8].mxu0 }
 0x79c   :  { %903 = vrot.lane.b32.xlu0 %v869_v5, %s1360_s15  ;;  %v1229_v51 = vpop.f32.mrb[9].mxu0 }
 0x79f   :  { %v874_v52 = vpop.f32.mrb[10].mxu0 }
 0x7a0   :  { %906 = vrot.lane.b32.xlu1 %v874_v52, %s1361_s1  ;;  %v1232_v53 = vpop.f32.mrb[11].mxu0 }
 0x7a3   :  { %v879_v0 = vpop.f32.mrb[12].mxu0 }
 0x7a4   :  { %910 = vrot.lane.b32.xlu0 %v879_v0, %s1362_s16  ;;  %v1235_v1 = vpop.f32.mrb[13].mxu0 }
 0x7a7   :  { %v884_v2 = vpop.f32.mrb[14].mxu0 }
 0x7a8   :  { %v1238_v3 = vpop.f32.mrb[15].mxu0 }
 0x7ab   :  { %v889_v4 = vpop.f32.mrb[16].mxu0 }
 0x7ac   :  { %915 = vrot.lane.b32.xlu1 %v889_v4, %s1363_s18  ;;  %v1241_v6 = vpop.f32.mrb[17].mxu0 }
 0x7ad   :  { %v538_v6 = vrot.slane %v1634_v16, 3 }
 0x7af   :  { %v894_v7 = vpop.f32.mrb[18].mxu0 }
 0x7b0   :  { %919 = vrot.lane.b32.xlu0 %v894_v7, %s1364_s2  ;;  %v1244_v8 = vpop.f32.mrb[19].mxu0 }
 0x7b3   :  { %v899_v10 = vpop.f32.mrb[20].mxu0 }
 0x7b4   :  { %522 = vrot.lane.b32.xlu0 %v1634_v16, %s1360_s15  ;;  %923 = vrot.lane.b32.xlu1 %v899_v10, %s1365_s19  ;;  %v1247_v12 = vpop.f32.mrb[21].mxu0 }
 0x7b8   :  { %534 = vrot.lane.b32.xlu0 %v532_v13, %s1362_s16  ;;  %528 = vrot.lane.b32.xlu1 %v526_v14, %s1361_s1  ;;  %v565_v13 = vshrl.u32 %v29_v32, 7 }
 0x7bc   :  { %561 = vperm.xlu0 %1290, %v45_v15   ;;  %543 = vrot.lane.b32.xlu1 %v541_v19, %s1363_s18 }
 0x80e   :  { %v904_v20 = vpop.permute.xlu0 %903 }
 0x80f   :  { %v905_v18 = vsel %vm402_vm4, %v904_v20, 0.0 }
 0x812   :  { %v907_v21 = vpop.permute.xlu1 %906 }
 0x813   :  { %v908_v17 = vsel %vm408_vm3, %v907_v21, 0.0 }
 0x814   :  { %v909_v27 = vadd.f32 %v908_v17, %v905_v18 }
 0x816   :  { %v911_v25 = vpop.permute.xlu0 %910 }
 0x817   :  { %v912_v26 = vsel %vm415_vm5, %v911_v25, 0.0 }
 0x818   :  { %v913_v28 = vadd.f32 %v912_v26, %v909_v27  ;;  %v566_v26 = vsub.s32 0, %v565_v13 }
 0x81a   :  { %v914_v22 = vadd.f32 %v913_v28, %v884_v2 }
 0x81e   :  { %v916_v29 = vpop.permute.xlu1 %915 }
 0x81f   :  { %v917_v30 = vsel %vm423_vm6, %v916_v29, 0.0 }
 0x820   :  { %v918_v34 = vadd.f32 %v917_v30, %v914_v22 }
 0x822   :  { %v920_v31 = vpop.permute.xlu0 %919 }
 0x823   :  { %v921_v33 = vsel %vm430_vm7, %v920_v31, 0.0 }
 0x824   :  { %v922_v23 = vadd.f32 %v921_v33, %v918_v34 }
 0x826   :  { %v924_v24 = vpop.permute.xlu1 %923  ;;  %v523_v48 = vpop.permute.xlu0 %522 }
 0x827   :  { %v925_v36 = vsel %vm437_vm8, %v924_v24, 0.0  ;;  %v524_v5 = vsel %vm402_vm4, %v523_v48, 0.0 }
 0x828   :  { %v926_v37 = vadd.f32 %v925_v36, %v922_v23 }
 0x82a   :  { %v927_v38 = vadd.f32 %v926_v37, %v1608_v44  ;;  %v547_v44 = vrot.slane %v1634_v16, 5  ;;  %v535_v49 = vpop.permute.xlu0 %534  ;;  %v529_v58 = vpop.permute.xlu1 %528 }
 0x82b   :  { %v530_v60 = vsel %vm408_vm3, %v529_v58, 0.0  ;;  %v536_v0 = vsel %vm415_vm5, %v535_v49, 0.0 }
 0x82c   :  { %v928_v39 = vmax.f32 %v927_v38, 0.0  ;;  %v531_v51 = vadd.f32 %v530_v60, %v524_v5 }
 0x82e   :  { %1249 = vmatpush3.msra.mxu1 %v928_v39  ;;  %v544_v50 = vpop.permute.xlu1 %543  ;;  %v537_v2 = vadd.f32 %v536_v0, %v531_v51 }
 0x82f   :  { %1251 = vmatmul.mubr.msk.f32.vlgmr.msra.gmra.mrb[20].mxu1 %vm137_vm2, %v1622_v11  ;;  %v545_v25 = vsel %vm423_vm6, %v544_v50, 0.0 }
 0x830   :  { %v540_v12 = vadd.f32 %v538_v6, %v537_v2 }
 0x832   :  { %v546_v18 = vadd.f32 %v545_v25, %v540_v12 }
 0x83b   :  { %v562_v59 = vpop.permute.xlu0 %561 }
 0x83c   :  { %v567_v34 = vrot.slane %v562_v59, %v566_v26 }
 0x902   :  { %v995_v40 = vpop.f32.mrb[20].mxu1 }
 0x903   :  { %999 = vrot.lane.b32.xlu0 %v995_v40, %s1360_s15  ;;  %v1003_v41 = vrot.slane %v995_v40, 1  ;;  %v1252_v42 = vpop.f32.mrb[21].mxu1  ;;  %v1018_v43 = vrot.slane %v995_v40, 4  ;;  %v1009_v45 = vrot.slane %v995_v40, 2  ;;  %v1024_v46 = vrot.slane %v995_v40, 5 }
 0x904   :  { %v1030_v11 = vrot.slane %v995_v40, 6  ;;  %v1015_v14 = vrot.slane %v995_v40, 3 }
 0x905   :  { %1005 = vrot.lane.b32.xlu1 %v1003_v41, %s1361_s1 }
 0x907   :  { %1020 = vrot.lane.b32.xlu0 %v1018_v43, %s1363_s18 }
 0x909   :  { %1011 = vrot.lane.b32.xlu1 %v1009_v45, %s1362_s16 }
 0x90b   :  { %1026 = vrot.lane.b32.xlu0 %v1024_v46, %s1364_s2 }
 0x90d   :  { %549 = vrot.lane.b32.xlu1 %v547_v44, %s1364_s2 }
 0x90f   :  { %1032 = vrot.lane.b32.xlu0 %v1030_v11, %s1365_s19 }
 0x911   :  { %555 = vrot.lane.b32.xlu1 %v553_v47, %s1365_s19 }
 0x975   :  { %v1000_v52 = vpop.permute.xlu0 %999 }
 0x976   :  { %v1001_v4 = vsel %vm402_vm4, %v1000_v52, 0.0 }
 0x977   :  { %v1006_v53 = vpop.permute.xlu1 %1005 }
 0x978   :  { %v1007_v1 = vsel %vm408_vm3, %v1006_v53, 0.0 }
 0x979   :  { %v1021_v3 = vpop.permute.xlu0 %1020  ;;  %v1008_v7 = vadd.f32 %v1007_v1, %v1001_v4 }
 0x97a   :  { %v1022_v17 = vsel %vm423_vm6, %v1021_v3, 0.0 }
 0x97b   :  { %v1012_v8 = vpop.permute.xlu1 %1011 }
 0x97c   :  { %v1013_v10 = vsel %vm415_vm5, %v1012_v8, 0.0 }
 0x97d   :  { %v1014_v15 = vadd.f32 %v1013_v10, %v1008_v7  ;;  %v1027_v19 = vpop.permute.xlu0 %1026 }
 0x97e   :  { %v1028_v32 = vsel %vm430_vm7, %v1027_v19, 0.0 }
 0x97f   :  { %v1017_v20 = vadd.f32 %v1015_v14, %v1014_v15  ;;  %v550_v21 = vpop.permute.xlu1 %549 }
 0x980   :  { %v551_v16 = vsel %vm430_vm7, %v550_v21, 0.0 }
 0x981   :  { %v1023_v27 = vadd.f32 %v1022_v17, %v1017_v20  ;;  %v1033_v28 = vpop.permute.xlu0 %1032  ;;  %v552_v30 = vadd.f32 %v551_v16, %v546_v18 }
 0x982   :  { %v1034_v31 = vsel %vm437_vm8, %v1033_v28, 0.0 }
 0x983   :  { %v1029_v29 = vadd.f32 %v1028_v32, %v1023_v27  ;;  %v556_v22 = vpop.permute.xlu1 %555 }
 0x984   :  { %v557_v33 = vsel %vm437_vm8, %v556_v22, 0.0 }
 0x985   :  { %v1035_v23 = vadd.f32 %v1034_v31, %v1029_v29  ;;  %v558_v24 = vadd.f32 %v557_v33, %v552_v30 }
 0x987   :  { %v1036_v36 = vadd.f32 %v1035_v23, %v567_v34  ;;  %v568_v37 = vadd.f32 %v567_v34, %v558_v24 }
 0x989   :  { %v1037_v38 = vsub.f32 0.0, %v1036_v36  ;;  %v569_v39 = vsub.f32 0.0, %v568_v37 }
 0x98b   :  { %v1038_v40 = vmul.f32 1.442695, %v1037_v38  ;;  %v570_v41 = vmul.f32 1.442695, %v569_v39 }
 0x98d   :  { %1324 = vpow2.f32 %v1038_v40 }
 0x98e   :  { %1326 = vpow2.f32 %v570_v41 }
 0x997   :  { %v1325_v42 = vpop.eup %1324 }
 0x998   :  { %v1327_v43 = vpop.eup %1326  ;;  %v1040_v45 = vadd.f32 1.0, %v1325_v42 }
 0x999   :  { %v572_v46 = vadd.f32 1.0, %v1327_v43 }
 0x99a   :  { %1328 = vrcp.f32 %v1040_v45 }
 0x99b   :  { %1330 = vrcp.f32 %v572_v46 }
 0x9a4   :  { %v1329_v44 = vpop.eup %1328 }
 0x9a5   :  { %v1331_v35 = vpop.eup %1330  ;;  %v1045_v11 = vrot.slane %v1329_v44, %v566_v26 }
 0x9a6   :  { %v577_v47 = vrot.slane %v1331_v35, %v566_v26 }
 0x9a7   :  { %v1046_v48 = vmul.f32 %v1045_v11, %v1649_v56  ;;  %v1047_v49 = vmul.f32 %v1045_v11, %v1646_v54  ;;  %v1048_v58 = vmul.f32 %v1045_v11, %v1654_v63  ;;  %v1049_v59 = vmul.f32 %v1045_v11, %v1657_v9 }
 0x9a8   :  { %v578_v60 = vmul.f32 %v577_v47, %v1509_v57  ;;  %v579_v50 = vmul.f32 %v577_v47, %v1506_v55  ;;  %v580_v5 = vmul.f32 %v577_v47, %v1515_v61  ;;  %v581_v51 = vmul.f32 %v577_v47, %v1518_v62 }
 0x9a9   :  { %1051 = vst [vmem:[#allocation3 + $0x20] sm:$0xff] %v1046_v48  ;;  %1052 = vst [vmem:[#allocation3 + $0x28] sm:$0xff] %v1047_v49 }
 0x9aa   :  { %1053 = vst [vmem:[#allocation3 + $0x30] sm:$0xff] %v1048_v58  ;;  %1054 = vst [vmem:[#allocation3 + $0x38] sm:$0xff] %v1049_v59 }
 0x9ab   :  { %582 = vst [vmem:[#allocation3] sm:$0xff] %v578_v60  ;;  %583 = vst [vmem:[#allocation3 + $0x8] sm:$0xff] %v579_v50 }
 0x9ac   :  { %584 = vst [vmem:[#allocation3 + $0x10] sm:$0xff] %v580_v5  ;;  %585 = vst [vmem:[#allocation3 + $0x18] sm:$0xff] %v581_v51 }
 0x9ad   :  { %1343 = shalt.err (!%p1340_p4)
}
 0x9ae   :  { %s1344_s25 = scalar_lea.hbm %s1787_s7, 1024 }
 0x9af   :  { %p1345_p5 = scmp.ne.s32.totalorder %s1787_s7, %s1344_s25  ;;  %p1348_p6 = scmp.lt.u32.totalorder %s1344_s25, %s1787_s7 }
 0x9b1   :  { %p1350_p7 = pnand %p1348_p6, %p1345_p5 }
 0x9b3   :  { %1353 = shalt.err (!%p1350_p7)
}
 0x9b4   :  { %s1367_s29 = smov 128   ;;  %s1368_s30 = smov 8  }
 0x9b5   :  { %1066 = dma.vmem_to_hbm [thread:$0]  %s1757_s21, 1024, %s1787_s7, [#allocation4], %s1367_s29, %s1367_s29, %s1368_s30  }
 0x9b6   :  { %1354 = dma.done.wait [#allocation4], 1024  }
 0x9b7   :  { %1355 = vsyncadd [#allocation4], 4294966272 }
 0x9b8   :  { %1070 = vsyncpa [#allocation4], 1 }

</bundles_post_ra>
